<compile_context>
chip_gen: v6e
topology: v6e:2x2x1
jax: 0.10.0
libtpu: 0.0.40
codegen_flags: <defaults>
</compile_context>

<pallas_src>
import jax
import jax.numpy as jnp
from jax.experimental import pallas as pl
from jax.experimental.pallas import tpu as pltpu


def _mlp_kernel(x_ref,
                w1_ref, b1_ref,
                w2_ref, b2_ref,
                w3_ref, b3_ref,
                w4_ref, b4_ref,
                out_ref, emb_ref):
    # x_ref: (d_in, bb) -- batch on lanes.
    x = x_ref[...]

    # fc1.  For input_dim == 1 this is a pure VPU broadcast-FMA
    # (h, 1) * (1, bb) + (h, 1); no reason to push a K=1 problem through the MXU.
    if w1_ref.shape[1] == 1:
        h1 = w1_ref[...] * x + b1_ref[...]
    else:
        h1 = jnp.dot(w1_ref[...], x,
                     preferred_element_type=jnp.float32) + b1_ref[...]
    h1 = jnp.maximum(h1, 0.0)

    # fc2: (h, h) @ (h, bb) -> MXU.  Operand dtype follows the weight dtype
    # (f32 by default, bf16 when matmul_dtype=bf16 was requested); the
    # accumulation is always f32.
    h2 = jnp.dot(w2_ref[...], h1.astype(w2_ref.dtype),
                 preferred_element_type=jnp.float32) + b2_ref[...]
    h2 = jnp.maximum(h2, 0.0)

    # fc3: (h/2, h) @ (h, bb) -> MXU.  Post-ReLU activation is the embedding.
    h3 = jnp.dot(w3_ref[...], h2.astype(w3_ref.dtype),
                 preferred_element_type=jnp.float32) + b3_ref[...]
    h3 = jnp.maximum(h3, 0.0)

    # fc4: single output feature -> weighted sublane reduction on VPU/XLU.
    # w4_ref is (h/2, 1), h3 is (h/2, bb).
    out = jnp.sum(w4_ref[...] * h3, axis=0, keepdims=True) + b4_ref[...]

    emb_ref[...] = h3.astype(emb_ref.dtype)   # single store-time cast
    out_ref[...] = out.astype(out_ref.dtype)


def _round_up(v, m):
    return -(-v // m) * m


def regressor_forward(x, params, *, block_b=16384,
                      emb_dtype=jnp.bfloat16,
                      matmul_dtype=jnp.float32,
                      emb_batch_major=True):
    """Fused 4-layer MLP forward matching the PyTorch `Regressor.forward`.

    x: (B, input_dim) float32.
    Returns (out, emb).  out is (B, 1) float32.  emb is (B, hidden//2) in
    `emb_dtype` when emb_batch_major=True (PyTorch layout), otherwise
    (hidden//2, B) (skips the wrapper transpose; cheaper for large B).

    block_b      : max batch-tile size (multiple of 128).
    emb_dtype    : dtype of the embedding output (dominant HBM write stream);
                   bf16 default halves its bandwidth, accumulation stays f32.
    matmul_dtype : dtype of the fc2/fc3 MXU operands; bf16 recommended on
                   v5e (f32 MXU is multi-pass), f32 default keeps exact
                   reference numerics.
    """
    (w1, b1), (w2, b2), (w3, b3), (w4, b4) = params
    B, d_in = x.shape
    h = w1.shape[1]
    h2 = w3.shape[1]

    assert block_b % 128 == 0, "block_b must be a multiple of 128"

    # Batch tile: big enough to amortize per-step overhead, small enough to
    # give the "parallel" batch axis >= 2 steps for large B (v7x megacore),
    # always a multiple of 128 so every lane-dim store is unmasked.
    bb = min(block_b, _round_up(-(-B // 2), 128))
    bb = max(bb, 128)
    Bp = _round_up(B, bb)

    # Kernel layout: batch on the lane axis.  (For d_in == 1 this transpose
    # is free; for d_in > 1 it is a real layout change done once in HBM.)
    xT = x.T  # (d_in, B)
    if Bp != B:
        xT = jnp.pad(xT, ((0, 0), (0, Bp - B)))

    grid = (Bp // bb,)

    # Weights in (out_features, in_features) layout; biases as (out, 1).
    w1k, b1k = w1.T, b1.T                               # (h, d_in), (h, 1)
    w2k, b2k = w2.T.astype(matmul_dtype), b2.T          # (h, h),    (h, 1)
    w3k, b3k = w3.T.astype(matmul_dtype), b3.T          # (h2, h),   (h2, 1)
    w4k, b4k = w4, b4                                   # (h2, 1),   (1, 1)

    def full_spec(shape):
        # Constant block index -> stays resident in VMEM across grid steps.
        return pl.BlockSpec(shape, lambda i: (0, 0))

    emb_bytes = jnp.dtype(emb_dtype).itemsize

    # Per-step VMEM footprint estimate (double-buffered x/out/emb + f32
    # activation temps + resident weights); set the scoped-VMEM limit with
    # ~2x headroom so large tiles compile on v5e (16 MiB default) and stay
    # inside v7x's 64 MiB physical VMEM.
    per_step = bb * (2 * 4 * d_in            # x   (double-buffered)
                     + 2 * 4 * 1             # out (double-buffered)
                     + 2 * emb_bytes * h2    # emb (double-buffered)
                     + 4 * h + 4 * h + 4 * h2)  # h1 / h2 / h3 temps
    weight_bytes = 4 * (d_in * h + h + h * h + h + h * h2 + h2 + h2 + 1)
    vmem_limit = int(min(max(2 * (per_step + weight_bytes), 16 << 20), 56 << 20))

    # Advisory cost hint so XLA schedules the surrounding pad/slice/transpose
    # sensibly around the custom call.
    flops = 2 * Bp * (d_in * h + h * h + h * h2 + h2)
    bytes_accessed = (4 * d_in * Bp + 4 * Bp + emb_bytes * h2 * Bp
                      + weight_bytes)
    cost = pl.CostEstimate(flops=flops, transcendentals=0,
                           bytes_accessed=bytes_accessed)

    outT, embT = pl.pallas_call(
        _mlp_kernel,
        out_shape=(
            jax.ShapeDtypeStruct((1, Bp), jnp.float32),
            jax.ShapeDtypeStruct((h2, Bp), emb_dtype),
        ),
        grid_spec=pltpu.PrefetchScalarGridSpec(
            num_scalar_prefetch=0,
            grid=grid,
            in_specs=[
                pl.BlockSpec((d_in, bb), lambda i: (0, i)),
                full_spec(w1k.shape), full_spec(b1k.shape),
                full_spec(w2k.shape), full_spec(b2k.shape),
                full_spec(w3k.shape), full_spec(b3k.shape),
                full_spec(w4k.shape), full_spec(b4k.shape),
            ],
            out_specs=[
                pl.BlockSpec((1, bb), lambda i: (0, i)),
                pl.BlockSpec((h2, bb), lambda i: (0, i)),
            ],
        ),
        compiler_params=pltpu.CompilerParams(
            dimension_semantics=("parallel",),
            vmem_limit_bytes=vmem_limit),
        cost_estimate=cost,
    )(xT, w1k, b1k, w2k, b2k, w3k, b3k, w4k, b4k)

    out = outT[:, :B].T                   # (B, 1)
    if emb_batch_major:
        emb = embT[:, :B].T               # (B, h2), PyTorch layout
    else:
        emb = embT[:, :B]                 # (h2, B), skips the HBM transpose
    return out, emb


def init_params(key, input_dim=1, n_hidden_size=32):
    """Deterministic init mimicking nn.Linear default (uniform +/- 1/sqrt(fan_in)).

    Weights stored as (in_features, out_features), biases as (1, out_features)
    (the wrapper transposes into the kernel's (out, in) layout).
    """
    dims = [
        (input_dim, n_hidden_size),
        (n_hidden_size, n_hidden_size),
        (n_hidden_size, n_hidden_size // 2),
        (n_hidden_size // 2, 1),
    ]
    params = []
    for (fan_in, fan_out) in dims:
        key, kw, kb = jax.random.split(key, 3)
        bound = 1.0 / (fan_in ** 0.5)
        w = jax.random.uniform(kw, (fan_in, fan_out), jnp.float32, -bound, bound)
        b = jax.random.uniform(kb, (1, fan_out), jnp.float32, -bound, bound)
        params.append((w, b))
    return params


def _reference_forward(x, params):
    """Pure-JAX reference for correctness checking."""
    (w1, b1), (w2, b2), (w3, b3), (w4, b4) = params
    h = jnp.maximum(x @ w1 + b1, 0.0)
    h = jnp.maximum(h @ w2 + b2, 0.0)
    emb = jnp.maximum(h @ w3 + b3, 0.0)
    out = emb @ w4 + b4
    return out, emb


if __name__ == "__main__":
    key = jax.random.PRNGKey(0)
    k_param, k_x1, k_x2 = jax.random.split(key, 3)

    input_dim = 1
    n_hidden = 32

    params = init_params(k_param, input_dim=input_dim, n_hidden_size=n_hidden)

    # Case 1: toy batch (16 rows), exact-precision config (f32 emb / f32 MXU)
    # -> single 128-wide grid step, must match the reference tightly.
    x_small = jax.random.normal(k_x1, (16, input_dim), jnp.float32)
    out_s, emb_s = regressor_forward(x_small, params,
                                     emb_dtype=jnp.float32,
                                     matmul_dtype=jnp.float32)
    jax.block_until_ready((out_s, emb_s))
    ref_out_s, ref_emb_s = _reference_forward(x_small, params)
    assert out_s.shape == (16, 1)
    assert emb_s.shape == (16, n_hidden // 2)
    assert jnp.allclose(out_s, ref_out_s, atol=1e-5, rtol=1e-5)
    assert jnp.allclose(emb_s, ref_emb_s, atol=1e-5, rtol=1e-5)

    # Case 2: ragged larger batch with the performance defaults
    # (bf16 embedding store, tile auto-clamped to 256 -> 2 parallel tiles).
    x_big = jax.random.normal(k_x2, (384, input_dim), jnp.float32)
    out_b, emb_b = regressor_forward(x_big, params)   # defaults: emb bf16
    jax.block_until_ready((out_b, emb_b))
    ref_out_b, ref_emb_b = _reference_forward(x_big, params)
    assert out_b.shape == (384, 1)
    assert emb_b.shape == (384, n_hidden // 2)
    assert emb_b.dtype == jnp.bfloat16
    assert jnp.allclose(out_b, ref_out_b, atol=1e-5, rtol=1e-5)
    assert jnp.allclose(emb_b.astype(jnp.float32), ref_emb_b,
                        atol=2e-2, rtol=2e-2)

    # Case 3: v5e-style config -- bf16 MXU operands (looser tolerance).
    out_v, emb_v = regressor_forward(x_big, params,
                                     matmul_dtype=jnp.bfloat16,
                                     emb_batch_major=False)   # (h2, B) layout
    jax.block_until_ready((out_v, emb_v))
    assert emb_v.shape == (n_hidden // 2, 384)
    assert jnp.allclose(out_v, ref_out_b, atol=5e-2, rtol=5e-2)
    assert jnp.allclose(emb_v.astype(jnp.float32).T, ref_emb_b,
                        atol=5e-2, rtol=5e-2)

    print("KERNEL_OK")
</pallas_src>

<mosaic_0001>
module attributes {stable_mosaic.version = 11 : i64} {
  func.func @_mlp_kernel(%arg0: i32, %arg1: memref<1x128xf32, #tpu.memory_space<vmem>>, %arg2: memref<32x1xf32, #tpu.memory_space<vmem>>, %arg3: memref<32x1xf32, #tpu.memory_space<vmem>>, %arg4: memref<32x32xf32, #tpu.memory_space<vmem>>, %arg5: memref<32x1xf32, #tpu.memory_space<vmem>>, %arg6: memref<16x32xf32, #tpu.memory_space<vmem>>, %arg7: memref<16x1xf32, #tpu.memory_space<vmem>>, %arg8: memref<16x1xf32, #tpu.memory_space<vmem>>, %arg9: memref<1x1xf32, #tpu.memory_space<vmem>>, %arg10: memref<1x128xf32, #tpu.memory_space<vmem>>, %arg11: memref<16x128xf32, #tpu.memory_space<vmem>>) attributes {dimension_semantics = [#tpu.dimension_semantics<parallel>], iteration_bounds = array<i64: 1>, scalar_prefetch = 0 : i64, scratch_operands = 0 : i64, tpu.core_type = #tpu.core_type<tc>, window_params = [{transform_indices = @transform_0, window_bounds = array<i64: 1, 128>}, {pipeline_mode = #tpu.pipeline_mode<synchronous>, transform_indices = @transform_1, window_bounds = array<i64: 32, 1>}, {pipeline_mode = #tpu.pipeline_mode<synchronous>, transform_indices = @transform_2, window_bounds = array<i64: 32, 1>}, {pipeline_mode = #tpu.pipeline_mode<synchronous>, transform_indices = @transform_3, window_bounds = array<i64: 32, 32>}, {pipeline_mode = #tpu.pipeline_mode<synchronous>, transform_indices = @transform_4, window_bounds = array<i64: 32, 1>}, {pipeline_mode = #tpu.pipeline_mode<synchronous>, transform_indices = @transform_5, window_bounds = array<i64: 16, 32>}, {pipeline_mode = #tpu.pipeline_mode<synchronous>, transform_indices = @transform_6, window_bounds = array<i64: 16, 1>}, {pipeline_mode = #tpu.pipeline_mode<synchronous>, transform_indices = @transform_7, window_bounds = array<i64: 16, 1>}, {pipeline_mode = #tpu.pipeline_mode<synchronous>, transform_indices = @transform_8, window_bounds = array<i64: 1, 1>}, {transform_indices = @transform_9, window_bounds = array<i64: 1, 128>}, {transform_indices = @transform_10, window_bounds = array<i64: 16, 128>}]} {
    %c0 = arith.constant 0 : index
    %c0_0 = arith.constant 0 : index
    %0 = vector.load %arg1[%c0, %c0_0] : memref<1x128xf32, #tpu.memory_space<vmem>>, vector<1x128xf32>
    %c0_1 = arith.constant 0 : index
    %c0_2 = arith.constant 0 : index
    %1 = vector.load %arg2[%c0_1, %c0_2] : memref<32x1xf32, #tpu.memory_space<vmem>>, vector<32x1xf32>
    %2 = vector.broadcast %1 : vector<32x1xf32> to vector<32x128xf32>
    %3 = vector.broadcast %0 : vector<1x128xf32> to vector<32x128xf32>
    %4 = arith.mulf %2, %3 : vector<32x128xf32>
    %c0_3 = arith.constant 0 : index
    %c0_4 = arith.constant 0 : index
    %5 = vector.load %arg3[%c0_3, %c0_4] : memref<32x1xf32, #tpu.memory_space<vmem>>, vector<32x1xf32>
    %6 = vector.broadcast %5 : vector<32x1xf32> to vector<32x128xf32>
    %7 = arith.addf %4, %6 : vector<32x128xf32>
    %cst = arith.constant 0.000000e+00 : f32
    %8 = vector.broadcast %cst : f32 to vector<32x128xf32>
    %9 = arith.maximumf %7, %8 : vector<32x128xf32>
    %c0_5 = arith.constant 0 : index
    %c0_6 = arith.constant 0 : index
    %10 = vector.load %arg4[%c0_5, %c0_6] : memref<32x32xf32, #tpu.memory_space<vmem>>, vector<32x32xf32>
    %cst_7 = arith.constant dense<0.000000e+00> : vector<32x128xf32>
    %11 = tpu.matmul %10, %9, %cst_7 {dimension_numbers = #tpu.dot_dimension_numbers<[1], [0], [0], [1], [0, 0, 1, 1], [], []>} : vector<32x32xf32>, vector<32x128xf32>, vector<32x128xf32> -> vector<32x128xf32>
    %c0_8 = arith.constant 0 : index
    %c0_9 = arith.constant 0 : index
    %12 = vector.load %arg5[%c0_8, %c0_9] : memref<32x1xf32, #tpu.memory_space<vmem>>, vector<32x1xf32>
    %13 = vector.broadcast %12 : vector<32x1xf32> to vector<32x128xf32>
    %14 = arith.addf %11, %13 : vector<32x128xf32>
    %cst_10 = arith.constant 0.000000e+00 : f32
    %15 = vector.broadcast %cst_10 : f32 to vector<32x128xf32>
    %16 = arith.maximumf %14, %15 : vector<32x128xf32>
    %c0_11 = arith.constant 0 : index
    %c0_12 = arith.constant 0 : index
    %17 = vector.load %arg6[%c0_11, %c0_12] : memref<16x32xf32, #tpu.memory_space<vmem>>, vector<16x32xf32>
    %cst_13 = arith.constant dense<0.000000e+00> : vector<16x128xf32>
    %18 = tpu.matmul %17, %16, %cst_13 {dimension_numbers = #tpu.dot_dimension_numbers<[1], [0], [0], [1], [0, 0, 1, 1], [], []>} : vector<16x32xf32>, vector<32x128xf32>, vector<16x128xf32> -> vector<16x128xf32>
    %c0_14 = arith.constant 0 : index
    %c0_15 = arith.constant 0 : index
    %19 = vector.load %arg7[%c0_14, %c0_15] : memref<16x1xf32, #tpu.memory_space<vmem>>, vector<16x1xf32>
    %20 = vector.broadcast %19 : vector<16x1xf32> to vector<16x128xf32>
    %21 = arith.addf %18, %20 : vector<16x128xf32>
    %cst_16 = arith.constant 0.000000e+00 : f32
    %22 = vector.broadcast %cst_16 : f32 to vector<16x128xf32>
    %23 = arith.maximumf %21, %22 : vector<16x128xf32>
    %c0_17 = arith.constant 0 : index
    %c0_18 = arith.constant 0 : index
    %24 = vector.load %arg8[%c0_17, %c0_18] : memref<16x1xf32, #tpu.memory_space<vmem>>, vector<16x1xf32>
    %25 = vector.broadcast %24 : vector<16x1xf32> to vector<16x128xf32>
    %26 = arith.mulf %25, %23 : vector<16x128xf32>
    %cst_19 = arith.constant dense<0.000000e+00> : vector<128xf32>
    %27 = vector.multi_reduction <add>, %26, %cst_19 [0] : vector<16x128xf32> to vector<128xf32>
    %28 = vector.shape_cast %27 : vector<128xf32> to vector<1x128xf32>
    %c0_20 = arith.constant 0 : index
    %c0_21 = arith.constant 0 : index
    %29 = vector.load %arg9[%c0_20, %c0_21] : memref<1x1xf32, #tpu.memory_space<vmem>>, vector<1x1xf32>
    %30 = vector.broadcast %29 : vector<1x1xf32> to vector<1x128xf32>
    %31 = arith.addf %28, %30 : vector<1x128xf32>
    %c0_22 = arith.constant 0 : index
    %c0_23 = arith.constant 0 : index
    %32 = vector.load %arg11[%c0_22, %c0_23] : memref<16x128xf32, #tpu.memory_space<vmem>>, vector<16x128xf32>
    tpu.vector_store %arg11[%c0_22, %c0_23], %23 {strides = array<i32>} : memref<16x128xf32, #tpu.memory_space<vmem>>, vector<16x128xf32>,
    %c0_24 = arith.constant 0 : index
    %c0_25 = arith.constant 0 : index
    %33 = vector.load %arg10[%c0_24, %c0_25] : memref<1x128xf32, #tpu.memory_space<vmem>>, vector<1x128xf32>
    tpu.vector_store %arg10[%c0_24, %c0_25], %31 {strides = array<i32>} : memref<1x128xf32, #tpu.memory_space<vmem>>, vector<1x128xf32>,
    return
  }
  func.func @transform_0(%arg0: i32) -> (i32, i32) {
    %c0_i32 = arith.constant 0 : i32
    %c0_i32_0 = arith.constant 0 : i32
    return %c0_i32, %arg0 : i32, i32
  }
  func.func @transform_1(%arg0: i32) -> (i32, i32) {
    %c0_i32 = arith.constant 0 : i32
    %c0_i32_0 = arith.constant 0 : i32
    %c0_i32_1 = arith.constant 0 : i32
    return %c0_i32, %c0_i32_0 : i32, i32
  }
  func.func @transform_2(%arg0: i32) -> (i32, i32) {
    %c0_i32 = arith.constant 0 : i32
    %c0_i32_0 = arith.constant 0 : i32
    %c0_i32_1 = arith.constant 0 : i32
    return %c0_i32, %c0_i32_0 : i32, i32
  }
  func.func @transform_3(%arg0: i32) -> (i32, i32) {
    %c0_i32 = arith.constant 0 : i32
    %c0_i32_0 = arith.constant 0 : i32
    %c0_i32_1 = arith.constant 0 : i32
    return %c0_i32, %c0_i32_0 : i32, i32
  }
  func.func @transform_4(%arg0: i32) -> (i32, i32) {
    %c0_i32 = arith.constant 0 : i32
    %c0_i32_0 = arith.constant 0 : i32
    %c0_i32_1 = arith.constant 0 : i32
    return %c0_i32, %c0_i32_0 : i32, i32
  }
  func.func @transform_5(%arg0: i32) -> (i32, i32) {
    %c0_i32 = arith.constant 0 : i32
    %c0_i32_0 = arith.constant 0 : i32
    %c0_i32_1 = arith.constant 0 : i32
    return %c0_i32, %c0_i32_0 : i32, i32
  }
  func.func @transform_6(%arg0: i32) -> (i32, i32) {
    %c0_i32 = arith.constant 0 : i32
    %c0_i32_0 = arith.constant 0 : i32
    %c0_i32_1 = arith.constant 0 : i32
    return %c0_i32, %c0_i32_0 : i32, i32
  }
  func.func @transform_7(%arg0: i32) -> (i32, i32) {
    %c0_i32 = arith.constant 0 : i32
    %c0_i32_0 = arith.constant 0 : i32
    %c0_i32_1 = arith.constant 0 : i32
    return %c0_i32, %c0_i32_0 : i32, i32
  }
  func.func @transform_8(%arg0: i32) -> (i32, i32) {
    %c0_i32 = arith.constant 0 : i32
    %c0_i32_0 = arith.constant 0 : i32
    %c0_i32_1 = arith.constant 0 : i32
    return %c0_i32, %c0_i32_0 : i32, i32
  }
  func.func @transform_9(%arg0: i32) -> (i32, i32) {
    %c0_i32 = arith.constant 0 : i32
    %c0_i32_0 = arith.constant 0 : i32
    return %c0_i32, %arg0 : i32, i32
  }
  func.func @transform_10(%arg0: i32) -> (i32, i32) {
    %c0_i32 = arith.constant 0 : i32
    %c0_i32_0 = arith.constant 0 : i32
    return %c0_i32, %arg0 : i32, i32
  }
}

</mosaic_0001>

<bundles_post_ra>
// kernel: tpu_custom_call.1
= control target key start
LH: loop header
LB: loop body
LE: loop exit
PB: predicated region body
PF: predicated region fallthrough
CT: control target
= control target key end

     0   :  { %s638_s0 = inlined_call_operand.vmem [shape: f32[1,128], index: 0, kind: input, shape index: {}]   ;;  %s639_s1 = inlined_call_operand.vmem [shape: f32[32,1], index: 1, kind: input, shape index: {}]   ;;  %s640_s2 = inlined_call_operand.vmem [shape: f32[32,1], index: 2, kind: input, shape index: {}]   ;;  %s641_s3 = inlined_call_operand.vmem [shape: f32[32,32], index: 3, kind: input, shape index: {}]   ;;  %s642_s4 = inlined_call_operand.vmem [shape: f32[32,1], index: 4, kind: input, shape index: {}]   ;;  %s643_s5 = inlined_call_operand.vmem [shape: f32[16,32], index: 5, kind: input, shape index: {}]   ;;  %s644_s6 = inlined_call_operand.vmem [shape: f32[16,1], index: 6, kind: input, shape index: {}]   ;;  %s645_s7 = inlined_call_operand.vmem [shape: f32[16,1], index: 7, kind: input, shape index: {}]   ;;  %s646_s8 = inlined_call_operand.<no memory space> [shape: f32[1,1], index: 8, kind: input, shape index: {}]   ;;  %s647_s9 = inlined_call_operand.hbm [shape: f32[1,128], index: 9, kind: output, shape index: {0}]   ;;  %s648_s10 = inlined_call_operand.hbm [shape: f32[16,128], index: 10, kind: output, shape index: {1}]  }
   0x1   :  { %v16_v0 = vstv %s646_s8 }
   0x2   :  { %17 = vst [vmem:[#allocation2] sm:$0x1] %v16_v0 }
   0x3   :  { %18 = vsyncpa [#allocation4], 0  ;;  %v76_v1 = vld [vmem:[%s640_s2 + $0x18] sm:$0xff]  ;;  %v494_v3 = vmov 0   ;;  %v41_v4 = vld [vmem:[%s639_s1 + $0x10] sm:$0xff] }
   0x4   :  { %v42_v2 = vld [vmem:[%s639_s1 + $0x18] sm:$0xff]  ;;  %449 = vset.pattern.permute.xlu1 %v494_v3  ;;  %448 = vset.pattern.permute.xlu0 %v494_v3  ;;  %v40_v5 = vld [vmem:[%s639_s1 + $0x8] sm:$0xff] }
   0x5   :  { %94 = vperm.xlu1 %449, %v76_v1   ;;  %60 = vperm.xlu0 %448, %v42_v2  }
   0x9   :  { %55 = vperm.xlu0 %448, %v41_v4   ;;  %50 = vperm.xlu1 %449, %v40_v5  }
   0xa   :  { %19 = vsyncpa [#allocation6], 0  ;;  %v75_v6 = vld [vmem:[%s640_s2 + $0x10] sm:$0xff]  ;;  %v39_v7 = vld [vmem:[%s639_s1] sm:$0xff]  ;;  %vm133_vm0 = vcmask 261120   ;;  %s495_s12 = smov [#allocation5]  }
   0xb   :  { %v74_v8 = vld [vmem:[%s640_s2 + $0x8] sm:$0xff]  ;;  %v73_v9 = vld [vmem:[%s640_s2] sm:$0xff]  ;;  %v112_v10 = vld [vmem:[%s642_s4 + $0x18] sm:$0xff]  ;;  %s382_s13 = sshll.u32 %s495_s12, 4  ;;  %s383_s13 = int_to_ptr.vmem [resolvable:$true] %s382_s13 }
   0xc   :  { %v111_v11 = vld [vmem:[%s642_s4 + $0x10] sm:$0xff]  ;;  %v105_v12 = vld [vmem:[%s641_s3] sm:$0xff]  ;;  %v110_v13 = vld [vmem:[%s642_s4 + $0x8] sm:$0xff]  ;;  %p455_p1 = scmp.lt.s32.totalorder %s383_s13, %s383_s13 }
   0xd   :  { %89 = vperm.xlu0 %448, %v75_v6   ;;  %45 = vperm.xlu1 %449, %v39_v7   ;;  %v109_v14 = vld [vmem:[%s642_s4] sm:$0xff]  ;;  %v238_v16 = vld [vmem:[%s644_s6 + $0x8] sm:$0xff]  ;;  %v107_v42 = vld [vmem:[%s641_s3 + $0x10] sm:$0xff] }
   0xe   :  { %426 = vmatprep.mubr.msk.f32.mxu0 %vm133_vm0, %v105_v12  ;;  %v237_v15 = vld [vmem:[%s644_s6] sm:$0xff]  ;;  %v333_v18 = vld [vmem:[%s645_s7 + $0x8] sm:$0xff]  ;;  %v108_v43 = vld [vmem:[%s641_s3 + $0x18] sm:$0xff] }
   0xf   :  { %v332_v17 = vld [vmem:[%s645_s7] sm:$0xff]  ;;  %v106_v41 = vld [vmem:[%s641_s3 + $0x8] sm:$0xff] }
  0x10   :  { %v353_v19 = vld [vmem:[#allocation2] sm:$0x1]  ;;  %v236_v61 = vld [vmem:[%s643_s5 + $0x8] sm:$0xff] }
  0x11   :  { %84 = vperm.xlu0 %448, %v74_v8   ;;  %79 = vperm.xlu1 %449, %v73_v9   ;;  %v397_v20 = vld [vmem:[%s638_s0] ss:$0 sm:$0xff] }
  0x12   :  { %v235_v44 = vld [vmem:[%s643_s5] sm:$0xff]  ;;  %s450_s5 = scalar_lea.vmem %s383_s13, 256 }
  0x13   :  { %440 = vmatprep.mubr.msk.f32.mxu1 %vm133_vm0, %v235_v44  ;;  %p451_p0 = scmp.ne.s32.totalorder %s383_s13, %s450_s5  ;;  %p456_p2 = scmp.lt.s32.totalorder %s450_s5, %s450_s5 }
  0x15   :  { %130 = vperm.xlu0 %448, %v112_v10   ;;  %125 = vperm.xlu1 %449, %v111_v11   ;;  %p457_p3 = por %p456_p2, %p455_p1 }
  0x17   :  { %p458_p4 = pnand %p457_p3, %p451_p0 }
  0x19   :  { %120 = vperm.xlu0 %448, %v110_v13   ;;  %115 = vperm.xlu1 %449, %v109_v14  }
  0x1d   :  { %241 = vperm.xlu0 %448, %v237_v15   ;;  %246 = vperm.xlu1 %449, %v238_v16  }
  0x21   :  { %336 = vperm.xlu0 %448, %v332_v17   ;;  %341 = vperm.xlu1 %449, %v333_v18  }
  0x25   :  { %356 = vperm.xlu0 %448, %v353_v19  }
  0x80   :  { %v95_v21 = vpop.permute.xlu1 %94  ;;  %v61_v22 = vpop.permute.xlu0 %60 }
  0x81   :  { %v72_v23 = vmul.f32 %v397_v20, %v61_v22 }
  0x83   :  { %v100_v24 = vadd.f32 %v95_v21, %v72_v23 }
  0x84   :  { %v56_v25 = vpop.permute.xlu0 %55  ;;  %v51_v26 = vpop.permute.xlu1 %50 }
  0x85   :  { %v104_v27 = vmax.f32 %v100_v24, 0.0  ;;  %v71_v28 = vmul.f32 %v397_v20, %v56_v25  ;;  %v70_v32 = vmul.f32 %v397_v20, %v51_v26 }
  0x87   :  { %418 = vmatprep.subr.mxu0 %v104_v27 }
  0x88   :  { %v90_v29 = vpop.permute.xlu0 %89  ;;  %v46_v30 = vpop.permute.xlu1 %45  ;;  %419 = vmatpush3.msra.mxu0 %v104_v27 }
  0x89   :  { %v99_v31 = vadd.f32 %v90_v29, %v71_v28  ;;  %v69_v34 = vmul.f32 %v397_v20, %v46_v30 }
  0x8b   :  { %v103_v33 = vmax.f32 %v99_v31, 0.0 }
  0x8c   :  { %v85_v35 = vpop.permute.xlu0 %84  ;;  %v80_v36 = vpop.permute.xlu1 %79 }
  0x8d   :  { %v98_v37 = vadd.f32 %v85_v35, %v70_v32  ;;  %v97_v38 = vadd.f32 %v80_v36, %v69_v34  ;;  %420 = vmatprep.subr.mxu0 %v103_v33 }
  0x8e   :  { %421 = vmatpush3.msra.mxu0 %v103_v33 }
  0x8f   :  { %v102_v39 = vmax.f32 %v98_v37, 0.0  ;;  %v101_v40 = vmax.f32 %v97_v38, 0.0 }
  0x90   :  { %v131_v45 = vpop.permute.xlu0 %130  ;;  %v126_v47 = vpop.permute.xlu1 %125 }
  0x91   :  { %422 = vmatprep.subr.mxu0 %v102_v39 }
  0x92   :  { %423 = vmatpush3.msra.mxu0 %v102_v39 }
  0x93   :  { %424 = vmatprep.subr.mxu0 %v101_v40 }
  0x94   :  { %425 = vmatpush3.msra.mxu0 %v101_v40  ;;  %v121_v51 = vpop.permute.xlu0 %120  ;;  %v116_v56 = vpop.permute.xlu1 %115 }
  0x95   :  { %427 = vmatmul.mubr.msk.f32.vlgmr.msra.gmra.mxu0 %vm133_vm0, %v106_v41 }
  0x96   :  { %429 = vmatprep.mubr.msk.f32.mxu0 %vm133_vm0, %v107_v42 }
  0x98   :  { %v242_v62 = vpop.permute.xlu0 %241  ;;  %v247_v63 = vpop.permute.xlu1 %246 }
  0x99   :  { %430 = vmatmul.mubr.msk.f32.gmra.mxu0 %vm133_vm0, %v108_v43 }
  0x9c   :  { %v337_v6 = vpop.permute.xlu0 %336  ;;  %v342_v7 = vpop.permute.xlu1 %341 }
 0x155   :  { %v428_v46 = vpop.f32.mrf.mxu0 }
 0x156   :  { %v218_v53 = vadd.f32 %v428_v46, %v121_v51 }
 0x157   :  { %v212_v48 = vpop.f32.mrf.mxu0 }
 0x158   :  { %v213_v57 = vadd.f32 %v212_v48, %v116_v56  ;;  %v232_v59 = vmax.f32 %v218_v53, 0.0 }
 0x159   :  { %v431_v49 = vpop.f32.mrf.mxu0 }
 0x15a   :  { %v228_v50 = vadd.f32 %v431_v49, %v131_v45  ;;  %v231_v60 = vmax.f32 %v213_v57, 0.0 }
 0x15b   :  { %v222_v52 = vpop.f32.mrf.mxu0 }
 0x15c   :  { %v234_v54 = vmax.f32 %v228_v50, 0.0  ;;  %v223_v55 = vadd.f32 %v222_v52, %v126_v47 }
 0x15e   :  { %v233_v58 = vmax.f32 %v223_v55, 0.0  ;;  %432 = vmatprep.subr.mxu1 %v234_v54 }
 0x15f   :  { %433 = vmatpush3.msra.mxu1 %v234_v54 }
 0x160   :  { %434 = vmatprep.subr.mxu1 %v233_v58 }
 0x161   :  { %435 = vmatpush3.msra.mxu1 %v233_v58 }
 0x162   :  { %436 = vmatprep.subr.mxu1 %v232_v59 }
 0x163   :  { %437 = vmatpush3.msra.mxu1 %v232_v59 }
 0x164   :  { %438 = vmatprep.subr.mxu1 %v231_v60 }
 0x165   :  { %439 = vmatpush3.msra.mxu1 %v231_v60 }
 0x166   :  { %441 = vmatmul.mubr.msk.f32.vlgmr.msra.gmra.mxu1 %vm133_vm0, %v236_v61 }
 0x226   :  { %v442_v0 = vpop.f32.mrf.mxu1 }
 0x227   :  { %v327_v1 = vadd.f32 %v442_v0, %v247_v63 }
 0x228   :  { %v321_v2 = vpop.f32.mrf.mxu1 }
 0x229   :  { %v331_v3 = vmax.f32 %v327_v1, 0.0  ;;  %v322_v4 = vadd.f32 %v321_v2, %v242_v62 }
 0x22b   :  { %365 = vst [vmem:[#allocation5 + $0x8] sm:$0xff] %v331_v3  ;;  %v330_v5 = vmax.f32 %v322_v4, 0.0  ;;  %v345_v8 = vmul.f32 %v342_v7, %v331_v3 }
 0x22d   :  { %v344_v9 = vmul.f32 %v337_v6, %v330_v5  ;;  %364 = vst [vmem:[#allocation5] sm:$0xff] %v330_v5 }
 0x22e   :  { %461 = shalt.err (!%p458_p4)
}
 0x22f   :  { %s496_s1 = smov 128   ;;  %s497_s14 = smov 8   ;;  %v359_v10 = vlaneseq  ;;  %v346_v11 = vadd.f32 %v345_v8, %v344_v9  ;;  %v357_v18 = vpop.permute.xlu0 %356 }
 0x230   :  { %388 = dma.vmem_to_hbm [thread:$0]  %s383_s13, 256, %s648_s10, [#allocation6], %s496_s1, %s496_s1, %s497_s14  }
 0x231   :  { %v347_v12 = vrot.slane %v346_v11, 4  ;;  %v360_v13 = vshrl.u32 %v359_v10, 7  ;;  %s498_s16 = smov [#allocation3]  }
 0x232   :  { %s373_s17 = sshll.u32 %s498_s16, 4  ;;  %s374_s17 = int_to_ptr.vmem [resolvable:$true] %s373_s17 }
 0x233   :  { %v348_v14 = vadd.f32 %v347_v12, %v346_v11  ;;  %v361_v16 = vsub.s32 0, %v360_v13  ;;  %s470_s18 = scalar_lea.vmem %s374_s17, 16  ;;  %s474_s10 = scalar_lea.vmem %s374_s17, 32 }
 0x234   :  { %p471_p5 = scmp.ne.s32.totalorder %s374_s17, %s470_s18  ;;  %p475_p6 = scmp.lt.s32.totalorder %s374_s17, %s374_s17 }
 0x235   :  { %v349_v15 = vrot.slane %v348_v14, 2  ;;  %v362_v20 = vrot.slane %v357_v18, %v361_v16  ;;  %p476_p7 = scmp.lt.s32.totalorder %s474_s10, %s470_s18 }
 0x237   :  { %v350_v17 = vadd.f32 %v349_v15, %v348_v14  ;;  %p477_p8 = por %p476_p7, %p475_p6 }
 0x239   :  { %v351_v19 = vrot.slane %v350_v17, 1  ;;  %p478_p9 = pnand %p477_p8, %p471_p5 }
 0x23b   :  { %v352_v21 = vadd.f32 %v351_v19, %v350_v17 }
 0x23d   :  { %v363_v22 = vadd.f32 %v362_v20, %v352_v21 }
 0x23f   :  { %366 = vst [vmem:[#allocation3] sm:$0x1] %v363_v22 }
 0x240   :  { %481 = shalt.err (!%p478_p9)
}
 0x241   :  { %376 = dma.vmem_to_hbm [thread:$0]  %s374_s17, 16, %s647_s9, [#allocation4]  }
 0x242   :  { %490 = dma.done.wait [#allocation4], 16  }
 0x243   :  { %491 = vsyncadd [#allocation4], 4294967280 }
 0x244   :  { %492 = dma.done.wait [#allocation6], 256  }
 0x245   :  { %493 = vsyncadd [#allocation6], 4294967040 }
 0x246   :  { %395 = vsyncpa [#allocation4], 1 }
 0x247   :  { %396 = vsyncpa [#allocation6], 1 }

</bundles_post_ra>
